<compile_context>
chip_gen: v7x
topology: tpu7x:2x2x1
jax: 0.10.0
libtpu: 0.0.40
codegen_flags: <defaults>
</compile_context>

<pallas_src>
import jax
import jax.numpy as jnp
import numpy as np
from jax.experimental import pallas as pl
from jax.experimental.pallas import tpu as pltpu


def _round_up(x: int, m: int) -> int:
    return ((x + m - 1) // m) * m


def _erf(x):
    # Abramowitz & Stegun 7.1.26 polynomial approximation, |err| <= 1.5e-7.
    # Uses only exp / mul / add / where so it is guaranteed to lower in
    # Mosaic (lax.erf support in Pallas-TPU is not guaranteed).
    a1, a2, a3, a4, a5 = (0.254829592, -0.284496736, 1.421413741,
                          -1.453152027, 1.061405429)
    p = 0.3275911
    ax = jnp.abs(x)
    t = 1.0 / (1.0 + p * ax)
    poly = ((((a5 * t + a4) * t + a3) * t + a2) * t + a1) * t
    y = 1.0 - poly * jnp.exp(-ax * ax)
    return jnp.where(x >= 0, y, -y)


def _gelu_exact(x):
    # Matches torch.nn.GELU() (erf formulation) to ~1e-7 absolute.
    return 0.5 * x * (1.0 + _erf(x * 0.7071067811865476))


# ---------------------------------------------------------------------------
# Kernels
# ---------------------------------------------------------------------------

def _router_kernel(x_ref, wg_ref, logits_ref):
    # x_ref: (tile_t, H), wg_ref: (H, E), logits_ref: (tile_t, E)
    logits_ref[...] = jnp.dot(
        x_ref[...], wg_ref[...], preferred_element_type=jnp.float32
    ).astype(logits_ref.dtype)


def _moe_experts_kernel(x_ref, wg_ref, wv_ref, wo_ref, cw_ref, o_ref, acc_ref):
    # Grid: (token_tiles [parallel], experts [arbitrary], ffn_tiles [arbitrary])
    # x_ref : (tile_t, H)        token tile
    # wg_ref: (H, tile_f)        expert e's 'linear'   weight chunk
    # wv_ref: (H, tile_f)        expert e's 'linear_v' weight chunk
    # wo_ref: (tile_f, H)        expert e's 'linear_1' weight chunk
    # cw_ref: (tile_t, E)        dense per-token combine weights
    # o_ref : (tile_t, H)        output tile (lane-dense, written once)
    # acc_ref: (tile_t, H) f32   VMEM accumulator across (e, f)
    e = pl.program_id(1)
    f = pl.program_id(2)
    n_e = pl.num_programs(1)
    n_f = pl.num_programs(2)

    @pl.when((e == 0) & (f == 0))
    def _():
        acc_ref[...] = jnp.zeros_like(acc_ref)

    x = x_ref[...]
    g = jnp.dot(x, wg_ref[...], preferred_element_type=jnp.float32)
    v = jnp.dot(x, wv_ref[...], preferred_element_type=jnp.float32)
    h = _gelu_exact(g) * v                                  # GLU branch (f32)
    y = jnp.dot(h.astype(wo_ref.dtype), wo_ref[...],
                preferred_element_type=jnp.float32)         # (tile_t, H)

    # Per-token combine weight for expert e (zero if e not in this token's
    # top-k): one-hot select column e of cw_ref and lane-reduce.
    lane = jax.lax.broadcasted_iota(jnp.int32, cw_ref.shape, 1)
    w_e = jnp.sum(jnp.where(lane == e, cw_ref[...].astype(jnp.float32), 0.0),
                  axis=1, keepdims=True)                    # (tile_t, 1)

    acc_ref[...] += w_e * y

    @pl.when((e == n_e - 1) & (f == n_f - 1))
    def _():
        o_ref[...] = acc_ref[...].astype(o_ref.dtype)


# ---------------------------------------------------------------------------
# pallas_call wrappers
# ---------------------------------------------------------------------------

def _router_logits(x, wg_t, *, tile_t):
    T, H = x.shape
    E = wg_t.shape[1]
    return pl.pallas_call(
        _router_kernel,
        out_shape=jax.ShapeDtypeStruct((T, E), x.dtype),
        grid_spec=pltpu.PrefetchScalarGridSpec(
            num_scalar_prefetch=0,
            grid=(T // tile_t,),
            in_specs=[
                pl.BlockSpec((tile_t, H), lambda t: (t, 0)),
                pl.BlockSpec((H, E), lambda t: (0, 0)),
            ],
            out_specs=pl.BlockSpec((tile_t, E), lambda t: (t, 0)),
        ),
        compiler_params=pltpu.CompilerParams(
            dimension_semantics=("parallel",)),
    )(x, wg_t)


def _moe_experts(x, w_in, w_v, w_out, comb, *, tile_t, tile_f):
    T, H = x.shape
    E, _, F = w_in.shape
    grid = (T // tile_t, E, F // tile_f)
    return pl.pallas_call(
        _moe_experts_kernel,
        out_shape=jax.ShapeDtypeStruct((T, H), x.dtype),
        grid_spec=pltpu.PrefetchScalarGridSpec(
            num_scalar_prefetch=0,
            grid=grid,
            in_specs=[
                pl.BlockSpec((tile_t, H), lambda t, e, f: (t, 0)),
                pl.BlockSpec((None, H, tile_f), lambda t, e, f: (e, 0, f)),
                pl.BlockSpec((None, H, tile_f), lambda t, e, f: (e, 0, f)),
                pl.BlockSpec((None, tile_f, H), lambda t, e, f: (e, f, 0)),
                pl.BlockSpec((tile_t, E), lambda t, e, f: (t, 0)),
            ],
            out_specs=pl.BlockSpec((tile_t, H), lambda t, e, f: (t, 0)),
            scratch_shapes=[pltpu.VMEM((tile_t, H), jnp.float32)],
        ),
        compiler_params=pltpu.CompilerParams(
            dimension_semantics=("parallel", "arbitrary", "arbitrary")),
    )(x, w_in, w_v, w_out, comb)


# ---------------------------------------------------------------------------
# Module wrapper (JAX port of grok1 MoeBlock)
# ---------------------------------------------------------------------------

class MoeBlock:
    def __init__(self, hidden_dim, ffn_dim, num_experts, top_k, *,
                 key, dtype=jnp.float32):
        self.hidden_dim = hidden_dim
        self.ffn_dim = ffn_dim
        self.num_experts = num_experts
        self.top_k = top_k
        kg, k1, k2, k3 = jax.random.split(key, 4)
        s_h = 1.0 / np.sqrt(hidden_dim)
        s_f = 1.0 / np.sqrt(ffn_dim)
        # Weights stored pre-transposed as (in, out) so y = x @ W  ==  nn.Linear
        self.wg_t = (jax.random.normal(kg, (hidden_dim, num_experts),
                                       dtype=jnp.float32) * s_h).astype(dtype)
        self.w_in = (jax.random.normal(k1, (num_experts, hidden_dim, ffn_dim),
                                       dtype=jnp.float32) * s_h).astype(dtype)   # 'linear'
        self.w_v = (jax.random.normal(k2, (num_experts, hidden_dim, ffn_dim),
                                      dtype=jnp.float32) * s_h).astype(dtype)    # 'linear_v'
        self.w_out = (jax.random.normal(k3, (num_experts, ffn_dim, hidden_dim),
                                        dtype=jnp.float32) * s_f).astype(dtype)  # 'linear_1'

    def __call__(self, hidden_states):
        B, S, H = hidden_states.shape
        T = B * S
        x = hidden_states.reshape(T, H)
        dtype = x.dtype

        # Token tile: sublane-aligned for the dtype, capped for VMEM.
        sub = {4: 8, 2: 16, 1: 32}.get(jnp.dtype(dtype).itemsize, 8)
        tile_t = min(256, _round_up(T, sub))
        T_pad = _round_up(T, tile_t)
        # ffn chunk: multiple of 128 lanes; bounds per-step weight VMEM.
        tile_f = min(self.ffn_dim, 512)
        if self.ffn_dim % tile_f:
            tile_f = self.ffn_dim

        x_pad = x if T_pad == T else jnp.pad(x, ((0, T_pad - T), (0, 0)))

        # --- router (Pallas matmul) + softmax/top-k routing (plain JAX) ---
        router_logits = _router_logits(x_pad, self.wg_t, tile_t=tile_t)[:T]
        routing = jax.nn.softmax(router_logits.astype(jnp.float32), axis=-1)
        top_w, top_idx = jax.lax.top_k(routing, self.top_k)
        top_w = top_w.astype(dtype)  # grok1: no renormalization of top-k weights
        # Dense (T, E) combine weights: routing weight if selected, else 0.
        comb = jnp.sum(jax.nn.one_hot(top_idx, self.num_experts, dtype=dtype)
                       * top_w[..., None], axis=1)
        comb_pad = comb if T_pad == T else jnp.pad(comb, ((0, T_pad - T), (0, 0)))

        # --- fused dense-MoE expert compute + weighted combine (Pallas) ---
        out = _moe_experts(x_pad, self.w_in, self.w_v, self.w_out, comb_pad,
                           tile_t=tile_t, tile_f=tile_f)[:T]
        return out.reshape(B, S, H), router_logits


# ---------------------------------------------------------------------------
# Self-test
# ---------------------------------------------------------------------------

if __name__ == "__main__":
    key = jax.random.PRNGKey(0)
    batch, seq, hidden, ffn = 2, 8, 128, 256
    num_experts, top_k = 4, 2

    k_x, k_w = jax.random.split(key)
    x = jax.random.normal(k_x, (batch, seq, hidden), dtype=jnp.float32)

    moe = MoeBlock(hidden, ffn, num_experts, top_k, key=k_w, dtype=jnp.float32)
    out, router_logits = moe(x)
    out, router_logits = jax.block_until_ready((out, router_logits))

    # Pure-JAX reference mirroring the PyTorch forward (dense-equivalent form).
    hp = jax.lax.Precision.HIGHEST
    xt = x.reshape(-1, hidden)
    ref_logits = jnp.dot(xt, moe.wg_t, precision=hp)
    probs = jax.nn.softmax(ref_logits.astype(jnp.float32), axis=-1)
    tw, ti = jax.lax.top_k(probs, top_k)
    tw = tw.astype(x.dtype)
    ref = jnp.zeros_like(xt)
    for e in range(num_experts):
        g = jnp.dot(xt, moe.w_in[e], precision=hp)
        v = jnp.dot(xt, moe.w_v[e], precision=hp)
        h = jax.nn.gelu(g, approximate=False) * v            # exact (erf) GELU
        y = jnp.dot(h, moe.w_out[e], precision=hp)
        w_e = jnp.sum(jnp.where(ti == e, tw, 0.0), axis=-1)
        ref = ref + w_e[:, None] * y
    ref = ref.reshape(batch, seq, hidden)

    np.testing.assert_allclose(np.asarray(router_logits), np.asarray(ref_logits),
                               rtol=2e-4, atol=2e-4)
    np.testing.assert_allclose(np.asarray(out), np.asarray(ref),
                               rtol=5e-4, atol=5e-4)
    assert out.shape == (batch, seq, hidden) and out.dtype == x.dtype
    assert router_logits.shape == (batch * seq, num_experts)

    print("KERNEL_OK")
</pallas_src>

<mosaic_0001>
module attributes {stable_mosaic.version = 11 : i64} {
  func.func @_router_kernel(%arg0: i32, %arg1: memref<16x128xf32, #tpu.memory_space<vmem>>, %arg2: memref<128x4xf32, #tpu.memory_space<vmem>>, %arg3: memref<16x4xf32, #tpu.memory_space<vmem>>) attributes {dimension_semantics = [#tpu.dimension_semantics<parallel>], iteration_bounds = array<i64: 1>, scalar_prefetch = 0 : i64, scratch_operands = 0 : i64, tpu.core_type = #tpu.core_type<tc>, window_params = [{transform_indices = @transform_0, window_bounds = array<i64: 16, 128>}, {pipeline_mode = #tpu.pipeline_mode<synchronous>, transform_indices = @transform_1, window_bounds = array<i64: 128, 4>}, {transform_indices = @transform_2, window_bounds = array<i64: 16, 4>}]} {
    %c0 = arith.constant 0 : index
    %c0_0 = arith.constant 0 : index
    %0 = vector.load %arg1[%c0, %c0_0] : memref<16x128xf32, #tpu.memory_space<vmem>>, vector<16x128xf32>
    %c0_1 = arith.constant 0 : index
    %c0_2 = arith.constant 0 : index
    %1 = vector.load %arg2[%c0_1, %c0_2] : memref<128x4xf32, #tpu.memory_space<vmem>>, vector<128x4xf32>
    %cst = arith.constant dense<0.000000e+00> : vector<16x4xf32>
    %2 = tpu.matmul %0, %1, %cst {dimension_numbers = #tpu.dot_dimension_numbers<[1], [0], [0], [1], [0, 0, 1, 1], [], []>} : vector<16x128xf32>, vector<128x4xf32>, vector<16x4xf32> -> vector<16x4xf32>
    %c0_3 = arith.constant 0 : index
    %c0_4 = arith.constant 0 : index
    %3 = vector.load %arg3[%c0_3, %c0_4] : memref<16x4xf32, #tpu.memory_space<vmem>>, vector<16x4xf32>
    tpu.vector_store %arg3[%c0_3, %c0_4], %2 {strides = array<i32>} : memref<16x4xf32, #tpu.memory_space<vmem>>, vector<16x4xf32>,
    return
  }
  func.func @transform_0(%arg0: i32) -> (i32, i32) {
    %c0_i32 = arith.constant 0 : i32
    %c0_i32_0 = arith.constant 0 : i32
    return %arg0, %c0_i32 : i32, i32
  }
  func.func @transform_1(%arg0: i32) -> (i32, i32) {
    %c0_i32 = arith.constant 0 : i32
    %c0_i32_0 = arith.constant 0 : i32
    %c0_i32_1 = arith.constant 0 : i32
    return %c0_i32, %c0_i32_0 : i32, i32
  }
  func.func @transform_2(%arg0: i32) -> (i32, i32) {
    %c0_i32 = arith.constant 0 : i32
    %c0_i32_0 = arith.constant 0 : i32
    return %arg0, %c0_i32 : i32, i32
  }
}

</mosaic_0001>

<bundles_post_ra>
// kernel: tpu_custom_call.1
= control target key start
LH: loop header
LB: loop body
LE: loop exit
PB: predicated region body
PF: predicated region fallthrough
CT: control target
= control target key end

     0   :  { %vm104_vm0 = vcmask 31744   ;;  %s271_s1 = inlined_call_operand.vmem [shape: f32[128,4], index: 1, kind: input, shape index: {}]   ;;  %s272_s0 = inlined_call_operand.vmem [shape: f32[16,128], index: 0, kind: input, shape index: {}]   ;;  %s273_s2 = inlined_call_operand.vmem [shape: f32[16,4], index: 2, kind: output, shape index: {}]  }
   0x1   :  { %v13_v0 = vld [vmem:[%s271_s1] sm:$0xff]  ;;  %v14_v1 = vld [vmem:[%s271_s1 + $0x8] sm:$0xff]  ;;  %v15_v2 = vld [vmem:[%s271_s1 + $0x10] sm:$0xff] }
   0x2   :  { %v164_v3 = vpack.c.bf16 %v14_v1, %v13_v0  ;;  %v16_v4 = vld [vmem:[%s271_s1 + $0x18] sm:$0xff]  ;;  %v17_v6 = vld [vmem:[%s271_s1 + $0x20] sm:$0xff]  ;;  %v18_v7 = vld [vmem:[%s271_s1 + $0x28] sm:$0xff] }
   0x3   :  { %v168_v5 = vpack.c.bf16 %v16_v4, %v15_v2  ;;  %v172_v8 = vpack.c.bf16 %v18_v7, %v17_v6  ;;  %v11_v9 = vld [vmem:[%s272_s0] sm:$0xff]  ;;  %v19_v10 = vld [vmem:[%s271_s1 + $0x30] sm:$0xff]  ;;  %v20_v11 = vld [vmem:[%s271_s1 + $0x38] sm:$0xff] }
   0x4   :  { %165 = vmatprep.subr.bf16.mxu0 %v164_v3  ;;  %161 = vmatprep.mubr.f32.mxu0 %v11_v9  ;;  %v176_v12 = vpack.c.bf16 %v20_v11, %v19_v10  ;;  %v21_v13 = vld [vmem:[%s271_s1 + $0x40] sm:$0xff]  ;;  %v22_v14 = vld [vmem:[%s271_s1 + $0x48] sm:$0xff]  ;;  %v23_v16 = vld [vmem:[%s271_s1 + $0x50] sm:$0xff] }
   0x5   :  { %167 = vmatpush3.bf16.msra.mxu0 %v164_v3  ;;  %v180_v15 = vpack.c.bf16 %v22_v14, %v21_v13  ;;  %v24_v17 = vld [vmem:[%s271_s1 + $0x58] sm:$0xff]  ;;  %v25_v19 = vld [vmem:[%s271_s1 + $0x60] sm:$0xff]  ;;  %v26_v20 = vld [vmem:[%s271_s1 + $0x68] sm:$0xff] }
   0x6   :  { %169 = vmatprep.subr.bf16.mxu0 %v168_v5  ;;  %v184_v18 = vpack.c.bf16 %v24_v17, %v23_v16  ;;  %v188_v21 = vpack.c.bf16 %v26_v20, %v25_v19  ;;  %v27_v22 = vld [vmem:[%s271_s1 + $0x70] sm:$0xff]  ;;  %v28_v23 = vld [vmem:[%s271_s1 + $0x78] sm:$0xff]  ;;  %v12_v25 = vld [vmem:[%s272_s0 + $0x8] sm:$0xff] }
   0x7   :  { %v192_v24 = vpack.c.bf16 %v28_v23, %v27_v22 }
   0x9   :  { %171 = vmatpush3.bf16.msra.mxu0 %v168_v5 }
   0xa   :  { %173 = vmatprep.subr.bf16.mxu0 %v172_v8 }
   0xd   :  { %175 = vmatpush3.bf16.msra.mxu0 %v172_v8 }
   0xe   :  { %177 = vmatprep.subr.bf16.mxu0 %v176_v12 }
  0x11   :  { %179 = vmatpush3.bf16.msra.mxu0 %v176_v12 }
  0x12   :  { %181 = vmatprep.subr.bf16.mxu0 %v180_v15 }
  0x15   :  { %183 = vmatpush3.bf16.msra.mxu0 %v180_v15 }
  0x16   :  { %185 = vmatprep.subr.bf16.mxu0 %v184_v18 }
  0x19   :  { %187 = vmatpush3.bf16.msra.mxu0 %v184_v18 }
  0x1a   :  { %189 = vmatprep.subr.bf16.mxu0 %v188_v21 }
  0x1d   :  { %191 = vmatpush3.bf16.msra.mxu0 %v188_v21 }
  0x1e   :  { %193 = vmatprep.subr.bf16.mxu0 %v192_v24 }
  0x21   :  { %195 = vmatpush3.bf16.msra.mxu0 %v192_v24 }
  0x24   :  { %162 = vmatmul.mubr.f32.vlgmr.msra.gmra.mrb[0].mxu0 %v12_v25 }
  0xf7   :  { %v163_v26 = vpop.f32.mrb[0].mxu0 }
  0xf8   :  { %106 = vst.msk [vmem:[%s273_s2 + $0x8] sm:$0xff] %vm104_vm0, %v163_v26  ;;  %v95_v27 = vpop.f32.mrb[1].mxu0 }
  0xf9   :  { %105 = vst.msk [vmem:[%s273_s2] sm:$0xff] %vm104_vm0, %v95_v27 }

</bundles_post_ra>
